<compile_context>
chip_gen: v7x
topology: tpu7x:2x2x1
jax: 0.10.0
libtpu: 0.0.40
codegen_flags: <defaults>
</compile_context>

<pallas_src>
import functools

import jax
import jax.numpy as jnp
from jax import lax
from jax.experimental import pallas as pl
from jax.experimental.pallas import tpu as pltpu

_LANE = 128     # last dim of every block padded to a multiple of this (TPU lane width)
_SUBLANE = 8    # batch padded to a multiple of this (TPU sublane width)


def _round_up(n, m):
    return ((n + m - 1) // m) * m


def _mlp_kernel(x_ref, bits_ref, w1_ref, b1_ref, wz_ref, bz_ref,
                w2_ref, b2_ref, w3_ref, b3_ref, o_ref, *,
                keep_thr, apply_dropout):
    """4x dropout + 4x (x @ W + b) + 3x ReLU on lane-dense [bm, 128k] f32 blocks."""

    def dropout(v, i):
        if not apply_dropout:            # baked at trace time (eval mode / p == 0)
            return v
        # Integer-threshold Bernoulli: bits are uniform int32 (bitcast of uint32),
        # keep iff bits < keep_thr where keep_thr = round((1-p) * 2^32) - 2^31.
        # The 1/(1-p) survivor scale is already folded into the next weight matrix,
        # so this is a single compare + select per element.
        bits = bits_ref[i, :, :v.shape[-1]]
        return jnp.where(bits < keep_thr, v, 0.0)

    h = dropout(x_ref[...], 0)
    h = jnp.maximum(
        jnp.dot(h, w1_ref[...], preferred_element_type=jnp.float32) + b1_ref[...], 0.0)
    h = dropout(h, 1)
    h = jnp.maximum(
        jnp.dot(h, wz_ref[...], preferred_element_type=jnp.float32) + bz_ref[...], 0.0)
    h = dropout(h, 2)
    h = jnp.maximum(
        jnp.dot(h, w2_ref[...], preferred_element_type=jnp.float32) + b2_ref[...], 0.0)
    h = dropout(h, 3)
    o_ref[...] = (
        jnp.dot(h, w3_ref[...], preferred_element_type=jnp.float32) + b3_ref[...]
    ).astype(o_ref.dtype)


def mlp_forward(x, packed, key, *, dropout_p, block_b=128):
    """x: [B, input_size] f32. packed: lane-padded / pre-scaled params from pack_params().
    key: fresh PRNG key per call (dropout masks must differ across training steps)."""
    B, input_size = x.shape
    in_pad, hid_pad = packed["w1"].shape
    z_pad = packed["wz"].shape[1]
    out_pad = packed["w3"].shape[1]
    output_size = packed["output_size"]

    # Batch tiling: single block for small B; 128-row tiles for large B, with a
    # "parallel" grid axis so Mosaic can shard tiles across TensorCores.
    bm = min(_round_up(B, _SUBLANE), block_b)
    B_pad = _round_up(B, bm)
    grid_b = B_pad // bm

    x_pad = jnp.zeros((B_pad, in_pad), jnp.float32).at[:B, :input_size].set(x)

    # One PRNG draw covers all four dropout masks: [4, B_pad, mask_lanes] int32.
    mask_lanes = max(in_pad, hid_pad, z_pad)
    bits = lax.bitcast_convert_type(
        jax.random.bits(key, (4, B_pad, mask_lanes), jnp.uint32), jnp.int32)

    apply_dropout = float(dropout_p) > 0.0
    if apply_dropout:
        keep_p = 1.0 - float(dropout_p)
        keep_thr = min(int(round(keep_p * 2.0 ** 32)), 2 ** 32 - 1) - 2 ** 31
    else:
        keep_thr = 0

    # Biases pre-broadcast outside the kernel (constants; no per-layer
    # broadcast_in_dim on the in-kernel critical path).
    b1 = jnp.broadcast_to(packed["b1"], (bm, hid_pad))
    bz = jnp.broadcast_to(packed["bz"], (bm, z_pad))
    b2 = jnp.broadcast_to(packed["b2"], (bm, hid_pad))
    b3 = jnp.broadcast_to(packed["b3"], (bm, out_pad))

    kernel = functools.partial(
        _mlp_kernel, keep_thr=keep_thr, apply_dropout=apply_dropout)

    def const(shape):  # weights / biases: same block for every batch tile
        return pl.BlockSpec(shape, lambda i: (0,) * len(shape))

    out_padded = pl.pallas_call(
        kernel,
        out_shape=jax.ShapeDtypeStruct((B_pad, out_pad), jnp.float32),
        grid=(grid_b,),
        in_specs=[
            pl.BlockSpec((bm, in_pad), lambda i: (i, 0)),            # x
            pl.BlockSpec((4, bm, mask_lanes), lambda i: (0, i, 0)),  # dropout bits
            const((in_pad, hid_pad)), const((bm, hid_pad)),          # w1, b1
            const((hid_pad, z_pad)), const((bm, z_pad)),             # wz, bz
            const((z_pad, hid_pad)), const((bm, hid_pad)),           # w2, b2
            const((hid_pad, out_pad)), const((bm, out_pad)),         # w3, b3
        ],
        out_specs=pl.BlockSpec((bm, out_pad), lambda i: (i, 0)),
        compiler_params=pltpu.CompilerParams(
            dimension_semantics=("parallel",)),
    )(x_pad, bits,
      packed["w1"], b1, packed["wz"], bz,
      packed["w2"], b2, packed["w3"], b3)

    # Lane-dense kernel output -> real output shape.
    return out_padded[:B, :output_size]


def init_params(key, input_size, hidden_size, z_size, output_size):
    """nn.Linear-style init; weights stored transposed as [in, out]."""
    ks = jax.random.split(key, 8)

    def linear(kw, kb, fan_in, fan_out):
        bound = 1.0 / (fan_in ** 0.5)
        w = jax.random.uniform(kw, (fan_in, fan_out), jnp.float32, -bound, bound)
        b = jax.random.uniform(kb, (fan_out,), jnp.float32, -bound, bound)
        return w, b

    w1, b1 = linear(ks[0], ks[1], input_size, hidden_size)
    wz, bz = linear(ks[2], ks[3], hidden_size, z_size)
    w2, b2 = linear(ks[4], ks[5], z_size, hidden_size)
    w3, b3 = linear(ks[6], ks[7], hidden_size, output_size)
    return dict(w1=w1, b1=b1, wz=wz, bz=bz, w2=w2, b2=b2, w3=w3, b3=b3)


def pack_params(raw, dropout_p):
    """Pad every feature dim to a multiple of 128 lanes (zero rows/cols stay zero through
    bias/ReLU/dropout) and fold the dropout 1/(1-p) survivor scale into the weights so
    in-kernel dropout is a pure mask/select."""
    inv_keep = 1.0 / (1.0 - float(dropout_p)) if float(dropout_p) > 0.0 else 1.0

    def pad_w(w):  # [in, out] -> [in_pad, out_pad], pre-scaled by 1/(1-p)
        fi, fo = w.shape
        out = jnp.zeros((_round_up(fi, _LANE), _round_up(fo, _LANE)), jnp.float32)
        return out.at[:fi, :fo].set(w * inv_keep)

    def pad_b(b):  # [out] -> [1, out_pad]
        fo = b.shape[-1]
        out = jnp.zeros((1, _round_up(fo, _LANE)), jnp.float32)
        return out.at[0, :fo].set(b.reshape(-1))

    return dict(
        w1=pad_w(raw["w1"]), b1=pad_b(raw["b1"]),
        wz=pad_w(raw["wz"]), bz=pad_b(raw["bz"]),
        w2=pad_w(raw["w2"]), b2=pad_b(raw["b2"]),
        w3=pad_w(raw["w3"]), b3=pad_b(raw["b3"]),
        output_size=int(raw["w3"].shape[1]),
    )


if __name__ == "__main__":
    # Small shapes consistent with the module's forward: x is [batch, input_size].
    batch, input_size, hidden_size, z_size, output_size = 8, 32, 32, 16, 8
    dropout_p = 0.2

    key = jax.random.PRNGKey(0)
    k_x, k_p, k_drop = jax.random.split(key, 3)

    x = jax.random.normal(k_x, (batch, input_size), jnp.float32)
    raw_params = init_params(k_p, input_size, hidden_size, z_size, output_size)
    packed = pack_params(raw_params, dropout_p)

    # NOTE: pass a fresh key per call/step, otherwise dropout degenerates to a fixed mask.
    out = mlp_forward(x, packed, k_drop, dropout_p=dropout_p)
    jax.block_until_ready(out)

    assert out.shape == (batch, output_size)
    assert out.dtype == jnp.float32
    print("KERNEL_OK")
</pallas_src>

<mosaic_0001>
module attributes {stable_mosaic.version = 11 : i64} {
  func.func @_mlp_kernel(%arg0: i32, %arg1: memref<8x128xf32, #tpu.memory_space<vmem>>, %arg2: memref<4x8x128xi32, #tpu.memory_space<vmem>>, %arg3: memref<128x128xf32, #tpu.memory_space<vmem>>, %arg4: memref<8x128xf32, #tpu.memory_space<vmem>>, %arg5: memref<128x128xf32, #tpu.memory_space<vmem>>, %arg6: memref<8x128xf32, #tpu.memory_space<vmem>>, %arg7: memref<128x128xf32, #tpu.memory_space<vmem>>, %arg8: memref<8x128xf32, #tpu.memory_space<vmem>>, %arg9: memref<128x128xf32, #tpu.memory_space<vmem>>, %arg10: memref<8x128xf32, #tpu.memory_space<vmem>>, %arg11: memref<8x128xf32, #tpu.memory_space<vmem>>) attributes {dimension_semantics = [#tpu.dimension_semantics<parallel>], iteration_bounds = array<i64: 1>, scalar_prefetch = 0 : i64, scratch_operands = 0 : i64, tpu.core_type = #tpu.core_type<tc>, window_params = [{transform_indices = @transform_0, window_bounds = array<i64: 8, 128>}, {transform_indices = @transform_1, window_bounds = array<i64: 4, 8, 128>}, {pipeline_mode = #tpu.pipeline_mode<synchronous>, transform_indices = @transform_2, window_bounds = array<i64: 128, 128>}, {pipeline_mode = #tpu.pipeline_mode<synchronous>, transform_indices = @transform_3, window_bounds = array<i64: 8, 128>}, {pipeline_mode = #tpu.pipeline_mode<synchronous>, transform_indices = @transform_4, window_bounds = array<i64: 128, 128>}, {pipeline_mode = #tpu.pipeline_mode<synchronous>, transform_indices = @transform_5, window_bounds = array<i64: 8, 128>}, {pipeline_mode = #tpu.pipeline_mode<synchronous>, transform_indices = @transform_6, window_bounds = array<i64: 128, 128>}, {pipeline_mode = #tpu.pipeline_mode<synchronous>, transform_indices = @transform_7, window_bounds = array<i64: 8, 128>}, {pipeline_mode = #tpu.pipeline_mode<synchronous>, transform_indices = @transform_8, window_bounds = array<i64: 128, 128>}, {pipeline_mode = #tpu.pipeline_mode<synchronous>, transform_indices = @transform_9, window_bounds = array<i64: 8, 128>}, {transform_indices = @transform_10, window_bounds = array<i64: 8, 128>}]} {
    %c0 = arith.constant 0 : index
    %c0_0 = arith.constant 0 : index
    %0 = vector.load %arg1[%c0, %c0_0] : memref<8x128xf32, #tpu.memory_space<vmem>>, vector<8x128xf32>
    %c0_1 = arith.constant 0 : index
    %c0_2 = arith.constant 0 : index
    %c0_3 = arith.constant 0 : index
    %1 = vector.load %arg2[%c0_1, %c0_2, %c0_3] : memref<4x8x128xi32, #tpu.memory_space<vmem>>, vector<1x8x128xi32>
    %2 = vector.shape_cast %1 : vector<1x8x128xi32> to vector<8x128xi32>
    %c1288490189_i32 = arith.constant 1288490189 : i32
    %3 = vector.broadcast %c1288490189_i32 : i32 to vector<8x128xi32>
    %4 = arith.cmpi slt, %2, %3 : vector<8x128xi32>
    %cst = arith.constant 0.000000e+00 : f32
    %5 = vector.broadcast %cst : f32 to vector<8x128xf32>
    %6 = arith.select %4, %0, %5 : vector<8x128xi1>, vector<8x128xf32>
    %c0_4 = arith.constant 0 : index
    %c0_5 = arith.constant 0 : index
    %7 = vector.load %arg3[%c0_4, %c0_5] : memref<128x128xf32, #tpu.memory_space<vmem>>, vector<128x128xf32>
    %cst_6 = arith.constant dense<0.000000e+00> : vector<8x128xf32>
    %8 = tpu.matmul %6, %7, %cst_6 {dimension_numbers = #tpu.dot_dimension_numbers<[1], [0], [0], [1], [0, 0, 1, 1], [], []>} : vector<8x128xf32>, vector<128x128xf32>, vector<8x128xf32> -> vector<8x128xf32>
    %c0_7 = arith.constant 0 : index
    %c0_8 = arith.constant 0 : index
    %9 = vector.load %arg4[%c0_7, %c0_8] : memref<8x128xf32, #tpu.memory_space<vmem>>, vector<8x128xf32>
    %10 = arith.addf %8, %9 : vector<8x128xf32>
    %cst_9 = arith.constant 0.000000e+00 : f32
    %11 = vector.broadcast %cst_9 : f32 to vector<8x128xf32>
    %12 = arith.maximumf %10, %11 : vector<8x128xf32>
    %c1 = arith.constant 1 : index
    %c0_10 = arith.constant 0 : index
    %c0_11 = arith.constant 0 : index
    %13 = vector.load %arg2[%c1, %c0_10, %c0_11] : memref<4x8x128xi32, #tpu.memory_space<vmem>>, vector<1x8x128xi32>
    %14 = vector.shape_cast %13 : vector<1x8x128xi32> to vector<8x128xi32>
    %c1288490189_i32_12 = arith.constant 1288490189 : i32
    %15 = vector.broadcast %c1288490189_i32_12 : i32 to vector<8x128xi32>
    %16 = arith.cmpi slt, %14, %15 : vector<8x128xi32>
    %cst_13 = arith.constant 0.000000e+00 : f32
    %17 = vector.broadcast %cst_13 : f32 to vector<8x128xf32>
    %18 = arith.select %16, %12, %17 : vector<8x128xi1>, vector<8x128xf32>
    %c0_14 = arith.constant 0 : index
    %c0_15 = arith.constant 0 : index
    %19 = vector.load %arg5[%c0_14, %c0_15] : memref<128x128xf32, #tpu.memory_space<vmem>>, vector<128x128xf32>
    %cst_16 = arith.constant dense<0.000000e+00> : vector<8x128xf32>
    %20 = tpu.matmul %18, %19, %cst_16 {dimension_numbers = #tpu.dot_dimension_numbers<[1], [0], [0], [1], [0, 0, 1, 1], [], []>} : vector<8x128xf32>, vector<128x128xf32>, vector<8x128xf32> -> vector<8x128xf32>
    %c0_17 = arith.constant 0 : index
    %c0_18 = arith.constant 0 : index
    %21 = vector.load %arg6[%c0_17, %c0_18] : memref<8x128xf32, #tpu.memory_space<vmem>>, vector<8x128xf32>
    %22 = arith.addf %20, %21 : vector<8x128xf32>
    %cst_19 = arith.constant 0.000000e+00 : f32
    %23 = vector.broadcast %cst_19 : f32 to vector<8x128xf32>
    %24 = arith.maximumf %22, %23 : vector<8x128xf32>
    %c2 = arith.constant 2 : index
    %c0_20 = arith.constant 0 : index
    %c0_21 = arith.constant 0 : index
    %25 = vector.load %arg2[%c2, %c0_20, %c0_21] : memref<4x8x128xi32, #tpu.memory_space<vmem>>, vector<1x8x128xi32>
    %26 = vector.shape_cast %25 : vector<1x8x128xi32> to vector<8x128xi32>
    %c1288490189_i32_22 = arith.constant 1288490189 : i32
    %27 = vector.broadcast %c1288490189_i32_22 : i32 to vector<8x128xi32>
    %28 = arith.cmpi slt, %26, %27 : vector<8x128xi32>
    %cst_23 = arith.constant 0.000000e+00 : f32
    %29 = vector.broadcast %cst_23 : f32 to vector<8x128xf32>
    %30 = arith.select %28, %24, %29 : vector<8x128xi1>, vector<8x128xf32>
    %c0_24 = arith.constant 0 : index
    %c0_25 = arith.constant 0 : index
    %31 = vector.load %arg7[%c0_24, %c0_25] : memref<128x128xf32, #tpu.memory_space<vmem>>, vector<128x128xf32>
    %cst_26 = arith.constant dense<0.000000e+00> : vector<8x128xf32>
    %32 = tpu.matmul %30, %31, %cst_26 {dimension_numbers = #tpu.dot_dimension_numbers<[1], [0], [0], [1], [0, 0, 1, 1], [], []>} : vector<8x128xf32>, vector<128x128xf32>, vector<8x128xf32> -> vector<8x128xf32>
    %c0_27 = arith.constant 0 : index
    %c0_28 = arith.constant 0 : index
    %33 = vector.load %arg8[%c0_27, %c0_28] : memref<8x128xf32, #tpu.memory_space<vmem>>, vector<8x128xf32>
    %34 = arith.addf %32, %33 : vector<8x128xf32>
    %cst_29 = arith.constant 0.000000e+00 : f32
    %35 = vector.broadcast %cst_29 : f32 to vector<8x128xf32>
    %36 = arith.maximumf %34, %35 : vector<8x128xf32>
    %c3 = arith.constant 3 : index
    %c0_30 = arith.constant 0 : index
    %c0_31 = arith.constant 0 : index
    %37 = vector.load %arg2[%c3, %c0_30, %c0_31] : memref<4x8x128xi32, #tpu.memory_space<vmem>>, vector<1x8x128xi32>
    %38 = vector.shape_cast %37 : vector<1x8x128xi32> to vector<8x128xi32>
    %c1288490189_i32_32 = arith.constant 1288490189 : i32
    %39 = vector.broadcast %c1288490189_i32_32 : i32 to vector<8x128xi32>
    %40 = arith.cmpi slt, %38, %39 : vector<8x128xi32>
    %cst_33 = arith.constant 0.000000e+00 : f32
    %41 = vector.broadcast %cst_33 : f32 to vector<8x128xf32>
    %42 = arith.select %40, %36, %41 : vector<8x128xi1>, vector<8x128xf32>
    %c0_34 = arith.constant 0 : index
    %c0_35 = arith.constant 0 : index
    %43 = vector.load %arg9[%c0_34, %c0_35] : memref<128x128xf32, #tpu.memory_space<vmem>>, vector<128x128xf32>
    %cst_36 = arith.constant dense<0.000000e+00> : vector<8x128xf32>
    %44 = tpu.matmul %42, %43, %cst_36 {dimension_numbers = #tpu.dot_dimension_numbers<[1], [0], [0], [1], [0, 0, 1, 1], [], []>} : vector<8x128xf32>, vector<128x128xf32>, vector<8x128xf32> -> vector<8x128xf32>
    %c0_37 = arith.constant 0 : index
    %c0_38 = arith.constant 0 : index
    %45 = vector.load %arg10[%c0_37, %c0_38] : memref<8x128xf32, #tpu.memory_space<vmem>>, vector<8x128xf32>
    %46 = arith.addf %44, %45 : vector<8x128xf32>
    %c0_39 = arith.constant 0 : index
    %c0_40 = arith.constant 0 : index
    %47 = vector.load %arg11[%c0_39, %c0_40] : memref<8x128xf32, #tpu.memory_space<vmem>>, vector<8x128xf32>
    tpu.vector_store %arg11[%c0_39, %c0_40], %46 {strides = array<i32>} : memref<8x128xf32, #tpu.memory_space<vmem>>, vector<8x128xf32>,
    return
  }
  func.func @transform_0(%arg0: i32) -> (i32, i32) {
    %c0_i32 = arith.constant 0 : i32
    %c0_i32_0 = arith.constant 0 : i32
    return %arg0, %c0_i32 : i32, i32
  }
  func.func @transform_1(%arg0: i32) -> (i32, i32, i32) {
    %c0_i32 = arith.constant 0 : i32
    %c0_i32_0 = arith.constant 0 : i32
    %c0_i32_1 = arith.constant 0 : i32
    return %c0_i32, %arg0, %c0_i32_0 : i32, i32, i32
  }
  func.func @transform_2(%arg0: i32) -> (i32, i32) {
    %c0_i32 = arith.constant 0 : i32
    %c0_i32_0 = arith.constant 0 : i32
    %c0_i32_1 = arith.constant 0 : i32
    return %c0_i32, %c0_i32_0 : i32, i32
  }
  func.func @transform_3(%arg0: i32) -> (i32, i32) {
    %c0_i32 = arith.constant 0 : i32
    %c0_i32_0 = arith.constant 0 : i32
    %c0_i32_1 = arith.constant 0 : i32
    return %c0_i32, %c0_i32_0 : i32, i32
  }
  func.func @transform_4(%arg0: i32) -> (i32, i32) {
    %c0_i32 = arith.constant 0 : i32
    %c0_i32_0 = arith.constant 0 : i32
    %c0_i32_1 = arith.constant 0 : i32
    return %c0_i32, %c0_i32_0 : i32, i32
  }
  func.func @transform_5(%arg0: i32) -> (i32, i32) {
    %c0_i32 = arith.constant 0 : i32
    %c0_i32_0 = arith.constant 0 : i32
    %c0_i32_1 = arith.constant 0 : i32
    return %c0_i32, %c0_i32_0 : i32, i32
  }
  func.func @transform_6(%arg0: i32) -> (i32, i32) {
    %c0_i32 = arith.constant 0 : i32
    %c0_i32_0 = arith.constant 0 : i32
    %c0_i32_1 = arith.constant 0 : i32
    return %c0_i32, %c0_i32_0 : i32, i32
  }
  func.func @transform_7(%arg0: i32) -> (i32, i32) {
    %c0_i32 = arith.constant 0 : i32
    %c0_i32_0 = arith.constant 0 : i32
    %c0_i32_1 = arith.constant 0 : i32
    return %c0_i32, %c0_i32_0 : i32, i32
  }
  func.func @transform_8(%arg0: i32) -> (i32, i32) {
    %c0_i32 = arith.constant 0 : i32
    %c0_i32_0 = arith.constant 0 : i32
    %c0_i32_1 = arith.constant 0 : i32
    return %c0_i32, %c0_i32_0 : i32, i32
  }
  func.func @transform_9(%arg0: i32) -> (i32, i32) {
    %c0_i32 = arith.constant 0 : i32
    %c0_i32_0 = arith.constant 0 : i32
    %c0_i32_1 = arith.constant 0 : i32
    return %c0_i32, %c0_i32_0 : i32, i32
  }
  func.func @transform_10(%arg0: i32) -> (i32, i32) {
    %c0_i32 = arith.constant 0 : i32
    %c0_i32_0 = arith.constant 0 : i32
    return %arg0, %c0_i32 : i32, i32
  }
}

</mosaic_0001>

<bundles_post_ra>
// kernel: tpu_custom_call.1
= control target key start
LH: loop header
LB: loop body
LE: loop exit
PB: predicated region body
PF: predicated region fallthrough
CT: control target
= control target key end

     0   :  { %15 = vsyncpa [#allocation3], 0  ;;  %s1204_s0 = inlined_call_operand.hbm [shape: f32[8,128], index: 0, kind: input, shape index: {}]   ;;  %s1205_s1 = inlined_call_operand.hbm [shape: s32[4,8,128], index: 1, kind: input, shape index: {}]   ;;  %s1206_s2 = inlined_call_operand.hbm [shape: f32[128,128], index: 2, kind: input, shape index: {}]   ;;  %s1207_s3 = inlined_call_operand.vmem [shape: f32[8,128], index: 3, kind: input, shape index: {}]   ;;  %s1208_s4 = inlined_call_operand.hbm [shape: f32[128,128], index: 4, kind: input, shape index: {}]   ;;  %s1209_s5 = inlined_call_operand.vmem [shape: f32[8,128], index: 5, kind: input, shape index: {}]   ;;  %s1210_s6 = inlined_call_operand.hbm [shape: f32[128,128], index: 6, kind: input, shape index: {}]   ;;  %s1211_s7 = inlined_call_operand.vmem [shape: f32[8,128], index: 7, kind: input, shape index: {}]   ;;  %s1212_s8 = inlined_call_operand.hbm [shape: f32[128,128], index: 8, kind: input, shape index: {}]   ;;  %s1213_s9 = inlined_call_operand.vmem [shape: f32[8,128], index: 9, kind: input, shape index: {}]   ;;  %s1214_s10 = inlined_call_operand.hbm [shape: f32[8,128], index: 10, kind: output, shape index: {}]  }
   0x1   :  { %16 = vsyncpa [#allocation6], 0 }
   0x2   :  { %17 = vsyncpa [#allocation9], 0 }
   0x3   :  { %18 = vsyncpa [#allocation12], 0 }
   0x4   :  { %19 = vsyncpa [#allocation4], 0  ;;  %s986_s13 = smov [#allocation5]   ;;  %s822_s17 = scalar_lea.hbm %s1205_s1, 512 }
   0x5   :  { %s35_s14 = sshll.u32 %s986_s13, 4  ;;  %p823_p0 = scmp.ne.s32.totalorder %s1205_s1, %s822_s17  ;;  %s36_s14 = int_to_ptr.vmem [resolvable:$true] %s35_s14 }
   0x6   :  { %p826_p1 = scmp.lt.u32.totalorder %s822_s17, %s1205_s1 }
   0x8   :  { %p828_p2 = pnand %p826_p1, %p823_p0 }
   0xa   :  { %831 = shalt.err (!%p828_p2)
}
   0xb   :  { %s832_s22 = scalar_lea.vmem %s36_s14, 512  ;;  %p837_p4 = scmp.lt.s32.totalorder %s36_s14, %s36_s14 }
   0xc   :  { %p833_p3 = scmp.ne.s32.totalorder %s36_s14, %s832_s22  ;;  %p838_p5 = scmp.lt.s32.totalorder %s832_s22, %s832_s22 }
   0xe   :  { %p839_p6 = por %p838_p5, %p837_p4 }
  0x10   :  { %p840_p7 = pnand %p839_p6, %p833_p3 }
  0x12   :  { %843 = shalt.err (!%p840_p7)
}
  0x13   :  { %s987_s23 = smov 128   ;;  %s988_s24 = smov 8  }
  0x14   :  { %41 = dma.hbm_to_vmem [thread:$0]  %s1205_s1, 512, %s36_s14, [#allocation6], %s987_s23, %s987_s23, %s988_s24  }
  0x15   :  { %s989_s27 = smov [#allocation8]   ;;  %s990_s29 = smov [#allocation2]  }
  0x16   :  { %s61_s28 = sshll.u32 %s989_s27, 4  ;;  %s26_s30 = sshll.u32 %s990_s29, 4  ;;  %s62_s28 = int_to_ptr.vmem [resolvable:$true] %s61_s28  ;;  %s27_s30 = int_to_ptr.vmem [resolvable:$true] %s26_s30 }
  0x17   :  { %s844_s13 = scalar_lea.hbm %s1208_s4, 2048 }
  0x18   :  { %p845_p8 = scmp.ne.s32.totalorder %s1208_s4, %s844_s13  ;;  %p848_p9 = scmp.lt.u32.totalorder %s844_s13, %s1208_s4 }
  0x1a   :  { %p850_p10 = pnand %p848_p9, %p845_p8 }
  0x1c   :  { %853 = shalt.err (!%p850_p10)
}
  0x1d   :  { %s854_s1 = scalar_lea.vmem %s62_s28, 2048  ;;  %p859_p12 = scmp.lt.s32.totalorder %s62_s28, %s62_s28 }
  0x1e   :  { %p855_p11 = scmp.ne.s32.totalorder %s62_s28, %s854_s1  ;;  %p860_p13 = scmp.lt.s32.totalorder %s854_s1, %s854_s1 }
  0x20   :  { %p861_p0 = por %p860_p13, %p859_p12 }
  0x22   :  { %p862_p1 = pnand %p861_p0, %p855_p11 }
  0x24   :  { %865 = shalt.err (!%p862_p1)
}
  0x25   :  { %67 = dma.hbm_to_vmem [thread:$0]  %s1208_s4, 2048, %s62_s28, [#allocation9], %s987_s23, %s987_s23, %s988_s24  }
  0x26   :  { %s866_s22 = scalar_lea.hbm %s1204_s0, 128 }
  0x27   :  { %p867_p2 = scmp.ne.s32.totalorder %s1204_s0, %s866_s22  ;;  %p870_p3 = scmp.lt.u32.totalorder %s866_s22, %s1204_s0 }
  0x29   :  { %p872_p4 = pnand %p870_p3, %p867_p2 }
  0x2b   :  { %875 = shalt.err (!%p872_p4)
}
  0x2c   :  { %s876_s11 = scalar_lea.vmem %s27_s30, 128  ;;  %p881_p6 = scmp.lt.s32.totalorder %s27_s30, %s27_s30 }
  0x2d   :  { %p877_p5 = scmp.ne.s32.totalorder %s27_s30, %s876_s11  ;;  %p882_p7 = scmp.lt.s32.totalorder %s876_s11, %s876_s11 }
  0x2f   :  { %p883_p8 = por %p882_p7, %p881_p6 }
  0x31   :  { %p884_p9 = pnand %p883_p8, %p877_p5 }
  0x33   :  { %887 = shalt.err (!%p884_p9)
}
  0x34   :  { %29 = dma.hbm_to_vmem [thread:$0]  %s1204_s0, 128, %s27_s30, [#allocation3]  }
  0x35   :  { %s991_s12 = smov [#allocation7]   ;;  %s992_s15 = smov [#allocation10]  }
  0x36   :  { %s47_s13 = sshll.u32 %s991_s12, 4  ;;  %s75_s16 = sshll.u32 %s992_s15, 4  ;;  %s48_s13 = int_to_ptr.vmem [resolvable:$true] %s47_s13  ;;  %s76_s16 = int_to_ptr.vmem [resolvable:$true] %s75_s16 }
  0x37   :  { %s888_s1 = scalar_lea.hbm %s1206_s2, 2048 }
  0x38   :  { %p889_p10 = scmp.ne.s32.totalorder %s1206_s2, %s888_s1  ;;  %p892_p11 = scmp.lt.u32.totalorder %s888_s1, %s1206_s2 }
  0x3a   :  { %p894_p12 = pnand %p892_p11, %p889_p10 }
  0x3c   :  { %897 = shalt.err (!%p894_p12)
}
  0x3d   :  { %s898_s0 = scalar_lea.vmem %s48_s13, 2048  ;;  %p903_p0 = scmp.lt.s32.totalorder %s48_s13, %s48_s13 }
  0x3e   :  { %p899_p13 = scmp.ne.s32.totalorder %s48_s13, %s898_s0  ;;  %p904_p1 = scmp.lt.s32.totalorder %s898_s0, %s898_s0 }
  0x40   :  { %p905_p2 = por %p904_p1, %p903_p0 }
  0x42   :  { %p906_p3 = pnand %p905_p2, %p899_p13 }
  0x44   :  { %909 = shalt.err (!%p906_p3)
}
  0x45   :  { %53 = dma.hbm_to_vmem [thread:$0]  %s1206_s2, 2048, %s48_s13, [#allocation6], %s987_s23, %s987_s23, %s988_s24  }
  0x46   :  { %s910_s27 = scalar_lea.hbm %s1210_s6, 2048 }
  0x47   :  { %p911_p4 = scmp.ne.s32.totalorder %s1210_s6, %s910_s27  ;;  %p914_p5 = scmp.lt.u32.totalorder %s910_s27, %s1210_s6 }
  0x49   :  { %p916_p6 = pnand %p914_p5, %p911_p4 }
  0x4b   :  { %919 = shalt.err (!%p916_p6)
}
  0x4c   :  { %s920_s12 = scalar_lea.vmem %s76_s16, 2048  ;;  %p925_p8 = scmp.lt.s32.totalorder %s76_s16, %s76_s16 }
  0x4d   :  { %p921_p7 = scmp.ne.s32.totalorder %s76_s16, %s920_s12  ;;  %p926_p9 = scmp.lt.s32.totalorder %s920_s12, %s920_s12 }
  0x4f   :  { %p927_p10 = por %p926_p9, %p925_p8 }
  0x51   :  { %p928_p11 = pnand %p927_p10, %p921_p7 }
  0x53   :  { %931 = shalt.err (!%p928_p11)
}
  0x54   :  { %81 = dma.hbm_to_vmem [thread:$0]  %s1210_s6, 2048, %s76_s16, [#allocation9], %s987_s23, %s987_s23, %s988_s24  }
  0x55   :  { %s993_s15 = smov [#allocation11]   ;;  %s932_s14 = scalar_lea.hbm %s1212_s8, 2048 }
  0x56   :  { %s89_s17 = sshll.u32 %s993_s15, 4  ;;  %p933_p12 = scmp.ne.s32.totalorder %s1212_s8, %s932_s14  ;;  %s90_s17 = int_to_ptr.vmem [resolvable:$true] %s89_s17 }
  0x57   :  { %p936_p13 = scmp.lt.u32.totalorder %s932_s14, %s1212_s8 }
  0x59   :  { %p938_p0 = pnand %p936_p13, %p933_p12 }
  0x5b   :  { %941 = shalt.err (!%p938_p0)
}
  0x5c   :  { %s942_s30 = scalar_lea.vmem %s90_s17, 2048  ;;  %p947_p2 = scmp.lt.s32.totalorder %s90_s17, %s90_s17 }
  0x5d   :  { %p943_p1 = scmp.ne.s32.totalorder %s90_s17, %s942_s30  ;;  %p948_p3 = scmp.lt.s32.totalorder %s942_s30, %s942_s30 }
  0x5f   :  { %p949_p4 = por %p948_p3, %p947_p2 }
  0x61   :  { %p950_p5 = pnand %p949_p4, %p943_p1 }
  0x63   :  { %953 = shalt.err (!%p950_p5)
}
  0x64   :  { %95 = dma.hbm_to_vmem [thread:$0]  %s1212_s8, 2048, %s90_s17, [#allocation12], %s987_s23, %s987_s23, %s988_s24  }
  0x65   :  { %976 = dma.done.wait [#allocation3], 128  }
  0x66   :  { %977 = vsyncadd [#allocation3], 4294967168 }
  0x67   :  { %978 = dma.done.wait [#allocation6], 2560  }
  0x68   :  { %979 = vsyncadd [#allocation6], 4294964736 }
  0x69   :  { %980 = dma.done.wait [#allocation9], 4096  }
  0x6a   :  { %981 = vsyncadd [#allocation9], 4294963200 }
  0x6b   :  { %982 = dma.done.wait [#allocation12], 2048  }
  0x6c   :  { %983 = vsyncadd [#allocation12], 4294965248  ;;  %v994_v0 = vmov 0.0|0.0   ;;  %vm995_vm0 = vmmov 0   ;;  %v996_v1 = vmov 0.0   ;;  %v120_v2 = vld [vmem:[#allocation7] sm:$0xff] }
  0x6d   :  { %714 = vmatprep.subr.bf16.mxu0 %v994_v0  ;;  %606 = vmatprep.mubr.msk.f32.mxu0 %vm995_vm0, %v996_v1  ;;  %v121_v3 = vld [vmem:[#allocation7 + $0x8] sm:$0xff]  ;;  %v122_v4 = vld [vmem:[#allocation7 + $0x10] sm:$0xff]  ;;  %v123_v6 = vld [vmem:[#allocation7 + $0x18] sm:$0xff]  ;;  %s997_s27 = smov [#allocation13]  }
  0x6e   :  { %738 = vmatprep.subr.bf16.mxu1 %v994_v0  ;;  %641 = vmatprep.mubr.msk.f32.mxu1 %vm995_vm0, %v996_v1  ;;  %v715_v5 = vpack.c.bf16 %v121_v3, %v120_v2  ;;  %v718_v7 = vpack.c.bf16 %v123_v6, %v122_v4  ;;  %v124_v8 = vld [vmem:[#allocation7 + $0x20] sm:$0xff]  ;;  %v125_v9 = vld [vmem:[#allocation7 + $0x28] sm:$0xff]  ;;  %v214_v12 = vld [vmem:[#allocation8 + $0x10] sm:$0xff]  ;;  %s490_s29 = sshll.u32 %s997_s27, 4  ;;  %s491_s29 = int_to_ptr.vmem [resolvable:$true] %s490_s29 }
  0x6f   :  { %v212_v10 = vld [vmem:[#allocation8] sm:$0xff]  ;;  %v213_v11 = vld [vmem:[#allocation8 + $0x8] sm:$0xff]  ;;  %v721_v13 = vpack.c.bf16 %v125_v9, %v124_v8  ;;  %v215_v15 = vld [vmem:[#allocation8 + $0x18] sm:$0xff]  ;;  %s954_s11 = scalar_lea.vmem %s491_s29, 128  ;;  %p959_p7 = scmp.lt.s32.totalorder %s491_s29, %s491_s29 }
  0x70   :  { %716 = vmatpush3.bf16.msra.mxu0 %v715_v5  ;;  %v739_v14 = vpack.c.bf16 %v213_v11, %v212_v10  ;;  %v126_v16 = vld [vmem:[#allocation7 + $0x30] sm:$0xff]  ;;  %v127_v17 = vld [vmem:[#allocation7 + $0x38] sm:$0xff]  ;;  %v742_v18 = vpack.c.bf16 %v215_v15, %v214_v12  ;;  %v216_v19 = vld [vmem:[#allocation8 + $0x20] sm:$0xff]  ;;  %p955_p6 = scmp.ne.s32.totalorder %s491_s29, %s954_s11  ;;  %p960_p8 = scmp.lt.s32.totalorder %s954_s11, %s954_s11 }
  0x71   :  { %717 = vmatprep.subr.bf16.mxu0 %v994_v0  ;;  %v217_v20 = vld [vmem:[#allocation8 + $0x28] sm:$0xff]  ;;  %v724_v21 = vpack.c.bf16 %v127_v17, %v126_v16  ;;  %v128_v22 = vld [vmem:[#allocation7 + $0x40] sm:$0xff]  ;;  %v218_v25 = vld [vmem:[#allocation8 + $0x30] sm:$0xff] }
  0x72   :  { %740 = vmatpush3.bf16.msra.mxu1 %v739_v14  ;;  %v129_v23 = vld [vmem:[#allocation7 + $0x48] sm:$0xff]  ;;  %v745_v24 = vpack.c.bf16 %v217_v20, %v216_v19  ;;  %v219_v26 = vld [vmem:[#allocation8 + $0x38] sm:$0xff]  ;;  %v130_v28 = vld [vmem:[#allocation7 + $0x50] sm:$0xff]  ;;  %p961_p9 = por %p960_p8, %p959_p7 }
  0x73   :  { %741 = vmatprep.subr.bf16.mxu1 %v994_v0  ;;  %v727_v27 = vpack.c.bf16 %v129_v23, %v128_v22  ;;  %v131_v29 = vld [vmem:[#allocation7 + $0x58] sm:$0xff]  ;;  %v748_v30 = vpack.c.bf16 %v219_v26, %v218_v25  ;;  %v220_v31 = vld [vmem:[#allocation8 + $0x40] sm:$0xff]  ;;  %v221_v32 = vld [vmem:[#allocation8 + $0x48] sm:$0xff] }
  0x74   :  { %719 = vmatpush3.bf16.msra.mxu0 %v718_v7  ;;  %v730_v33 = vpack.c.bf16 %v131_v29, %v130_v28  ;;  %v132_v34 = vld [vmem:[#allocation7 + $0x60] sm:$0xff]  ;;  %v133_v35 = vld [vmem:[#allocation7 + $0x68] sm:$0xff]  ;;  %v751_v36 = vpack.c.bf16 %v221_v32, %v220_v31  ;;  %v222_v37 = vld [vmem:[#allocation8 + $0x50] sm:$0xff]  ;;  %p962_p10 = pnand %p961_p9, %p955_p6 }
  0x75   :  { %720 = vmatprep.subr.bf16.mxu0 %v994_v0  ;;  %v223_v38 = vld [vmem:[#allocation8 + $0x58] sm:$0xff]  ;;  %v733_v39 = vpack.c.bf16 %v133_v35, %v132_v34  ;;  %v134_v40 = vld [vmem:[#allocation7 + $0x70] sm:$0xff]  ;;  %v224_v43 = vld [vmem:[#allocation8 + $0x60] sm:$0xff] }
  0x76   :  { %743 = vmatpush3.bf16.msra.mxu1 %v742_v18  ;;  %v135_v41 = vld [vmem:[#allocation7 + $0x78] sm:$0xff]  ;;  %v754_v42 = vpack.c.bf16 %v223_v38, %v222_v37  ;;  %v225_v44 = vld [vmem:[#allocation8 + $0x68] sm:$0xff]  ;;  %v117_v46 = vld [vmem:[#allocation5] sm:$0xff] }
  0x77   :  { %744 = vmatprep.subr.bf16.mxu1 %v994_v0  ;;  %v736_v45 = vpack.c.bf16 %v135_v41, %v134_v40  ;;  %v757_v47 = vpack.c.bf16 %v225_v44, %v224_v43  ;;  %v116_v48 = vld [vmem:[#allocation2] sm:$0xff]  ;;  %vm118_vm1 = vcmp.lt.s32.totalorder %v117_v46, 1288490189  ;;  %v226_v49 = vld [vmem:[#allocation8 + $0x70] sm:$0xff]  ;;  %v304_v52 = vld [vmem:[#allocation10] sm:$0xff] }
  0x78   :  { %722 = vmatpush3.bf16.msra.mxu0 %v721_v13  ;;  %v227_v50 = vld [vmem:[#allocation8 + $0x78] sm:$0xff]  ;;  %v305_v53 = vld [vmem:[#allocation10 + $0x8] sm:$0xff]  ;;  %v306_v54 = vld [vmem:[#allocation10 + $0x10] sm:$0xff] }
  0x79   :  { %723 = vmatprep.subr.bf16.mxu0 %v994_v0  ;;  %v760_v51 = vpack.c.bf16 %v227_v50, %v226_v49  ;;  %v763_v55 = vpack.c.bf16 %v305_v53, %v304_v52  ;;  %v307_v56 = vld [vmem:[#allocation10 + $0x18] sm:$0xff]  ;;  %v308_v58 = vld [vmem:[#allocation10 + $0x20] sm:$0xff]  ;;  %v309_v59 = vld [vmem:[#allocation10 + $0x28] sm:$0xff] }
  0x7a   :  { %746 = vmatpush3.bf16.msra.mxu1 %v745_v24  ;;  %v766_v57 = vpack.c.bf16 %v307_v56, %v306_v54  ;;  %v769_v60 = vpack.c.bf16 %v309_v59, %v308_v58  ;;  %v310_v61 = vld [vmem:[#allocation10 + $0x30] sm:$0xff]  ;;  %v311_v62 = vld [vmem:[#allocation10 + $0x38] sm:$0xff]  ;;  %v312_v2 = vld [vmem:[#allocation10 + $0x40] sm:$0xff] }
  0x7b   :  { %747 = vmatprep.subr.bf16.mxu1 %v994_v0  ;;  %v772_v63 = vpack.c.bf16 %v311_v62, %v310_v61  ;;  %v313_v3 = vld [vmem:[#allocation10 + $0x48] sm:$0xff]  ;;  %v314_v5 = vld [vmem:[#allocation10 + $0x50] sm:$0xff]  ;;  %v315_v6 = vld [vmem:[#allocation10 + $0x58] sm:$0xff] }
  0x7c   :  { %725 = vmatpush3.bf16.msra.mxu0 %v724_v21  ;;  %v775_v4 = vpack.c.bf16 %v313_v3, %v312_v2  ;;  %v778_v7 = vpack.c.bf16 %v315_v6, %v314_v5  ;;  %v316_v8 = vld [vmem:[#allocation10 + $0x60] sm:$0xff]  ;;  %v317_v9 = vld [vmem:[#allocation10 + $0x68] sm:$0xff]  ;;  %v136_v11 = vld [vmem:[%s1207_s3] sm:$0xff] }
  0x7d   :  { %726 = vmatprep.subr.bf16.mxu0 %v994_v0  ;;  %v781_v10 = vpack.c.bf16 %v317_v9, %v316_v8  ;;  %v209_v12 = vld [vmem:[#allocation5 + $0x8] sm:$0xff]  ;;  %v318_v17 = vld [vmem:[#allocation10 + $0x70] sm:$0xff]  ;;  %v319_v18 = vld [vmem:[#allocation10 + $0x78] sm:$0xff] }
  0x7e   :  { %749 = vmatpush3.bf16.msra.mxu1 %v748_v30  ;;  %vm210_vm2 = vcmp.lt.s32.totalorder %v209_v12, 1288490189  ;;  %v784_v19 = vpack.c.bf16 %v319_v18, %v318_v17  ;;  %v396_v20 = vld [vmem:[#allocation11] sm:$0xff]  ;;  %v397_v21 = vld [vmem:[#allocation11 + $0x8] sm:$0xff]  ;;  %v398_v22 = vld [vmem:[#allocation11 + $0x10] sm:$0xff] }
  0x7f   :  { %750 = vmatprep.subr.bf16.mxu1 %v994_v0  ;;  %v787_v23 = vpack.c.bf16 %v397_v21, %v396_v20  ;;  %v399_v24 = vld [vmem:[#allocation11 + $0x18] sm:$0xff]  ;;  %v400_v26 = vld [vmem:[#allocation11 + $0x20] sm:$0xff]  ;;  %v405_v32 = vld [vmem:[#allocation11 + $0x48] sm:$0xff] }
  0x80   :  { %728 = vmatpush3.bf16.msra.mxu0 %v727_v27  ;;  %v790_v25 = vpack.c.bf16 %v399_v24, %v398_v22  ;;  %v401_v27 = vld [vmem:[#allocation11 + $0x28] sm:$0xff]  ;;  %v403_v29 = vld [vmem:[#allocation11 + $0x38] sm:$0xff]  ;;  %v404_v31 = vld [vmem:[#allocation11 + $0x40] sm:$0xff] }
  0x81   :  { %729 = vmatprep.subr.bf16.mxu0 %v994_v0  ;;  %v793_v28 = vpack.c.bf16 %v401_v27, %v400_v26  ;;  %v406_v34 = vld [vmem:[#allocation11 + $0x50] sm:$0xff]  ;;  %v407_v35 = vld [vmem:[#allocation11 + $0x58] sm:$0xff]  ;;  %v408_v37 = vld [vmem:[#allocation11 + $0x60] sm:$0xff] }
  0x82   :  { %752 = vmatpush3.bf16.msra.mxu1 %v751_v36  ;;  %v802_v36 = vpack.c.bf16 %v407_v35, %v406_v34  ;;  %v409_v38 = vld [vmem:[#allocation11 + $0x68] sm:$0xff]  ;;  %v228_v40 = vld [vmem:[%s1209_s5] sm:$0xff]  ;;  %v301_v41 = vld [vmem:[#allocation5 + $0x10] sm:$0xff] }
  0x83   :  { %753 = vmatprep.subr.bf16.mxu1 %v994_v0  ;;  %vm302_vm3 = vcmp.lt.s32.totalorder %v301_v41, 1288490189  ;;  %v410_v46 = vld [vmem:[#allocation11 + $0x70] sm:$0xff]  ;;  %v320_v49 = vld [vmem:[%s1211_s7] sm:$0xff] }
  0x84   :  { %731 = vmatpush3.bf16.msra.mxu0 %v730_v33  ;;  %v799_v33 = vpack.c.bf16 %v405_v32, %v404_v31  ;;  %v412_v54 = vld [vmem:[%s1213_s9] sm:$0xff] }
  0x85   :  { %732 = vmatprep.subr.bf16.mxu0 %v994_v0 }
  0x86   :  { %755 = vmatpush3.bf16.msra.mxu1 %v754_v42 }
  0x87   :  { %756 = vmatprep.subr.bf16.mxu1 %v994_v0 }
  0x88   :  { %734 = vmatpush3.bf16.msra.mxu0 %v733_v39  ;;  %v805_v39 = vpack.c.bf16 %v409_v38, %v408_v37 }
  0x89   :  { %735 = vmatprep.subr.bf16.mxu0 %v994_v0 }
  0x8a   :  { %758 = vmatpush3.bf16.msra.mxu1 %v757_v47  ;;  %v411_v47 = vld [vmem:[#allocation11 + $0x78] sm:$0xff] }
  0x8b   :  { %759 = vmatprep.subr.bf16.mxu1 %v994_v0 }
  0x8c   :  { %737 = vmatpush3.bf16.msra.mxu0 %v736_v45 }
  0x8d   :  { %762 = vmatprep.subr.bf16.mxu0 %v994_v0 }
  0x8e   :  { %761 = vmatpush3.bf16.msra.mxu1 %v760_v51 }
  0x8f   :  { %607 = vmatmul.mubr.msk.f32.vlgmr.msra.gmra.mrb[0].mxu0 %vm118_vm1, %v116_v48  ;;  %786 = vmatprep.subr.bf16.mxu1 %v994_v0  ;;  %v808_v48 = vpack.c.bf16 %v411_v47, %v410_v46 }
  0x90   :  { %676 = vmatprep.mubr.msk.f32.mxu0 %vm995_vm0, %v996_v1  ;;  %764 = vmatpush3.bf16.msra.mxu0 %v763_v55 }
  0x91   :  { %765 = vmatprep.subr.bf16.mxu0 %v994_v0 }
  0x94   :  { %767 = vmatpush3.bf16.msra.mxu0 %v766_v57 }
  0x95   :  { %768 = vmatprep.subr.bf16.mxu0 %v994_v0 }
  0x98   :  { %770 = vmatpush3.bf16.msra.mxu0 %v769_v60 }
  0x99   :  { %771 = vmatprep.subr.bf16.mxu0 %v994_v0 }
  0x9c   :  { %773 = vmatpush3.bf16.msra.mxu0 %v772_v63 }
  0x9d   :  { %774 = vmatprep.subr.bf16.mxu0 %v994_v0 }
  0xa0   :  { %776 = vmatpush3.bf16.msra.mxu0 %v775_v4 }
  0xa1   :  { %777 = vmatprep.subr.bf16.mxu0 %v994_v0 }
  0xa4   :  { %779 = vmatpush3.bf16.msra.mxu0 %v778_v7 }
  0xa5   :  { %780 = vmatprep.subr.bf16.mxu0 %v994_v0 }
  0xa8   :  { %782 = vmatpush3.bf16.msra.mxu0 %v781_v10 }
  0xa9   :  { %783 = vmatprep.subr.bf16.mxu0 %v994_v0 }
  0xac   :  { %785 = vmatpush3.bf16.msra.mxu0 %v784_v19 }
 0x162   :  { %v203_v13 = vpop.f32.mrb[0].mxu0 }
 0x163   :  { %v204_v14 = vadd.f32 %v203_v13, %v136_v11  ;;  %v608_v15 = vpop.f32.mrb[1].mxu0 }
 0x165   :  { %v207_v16 = vmax.f32 %v204_v14, 0.0 }
 0x167   :  { %642 = vmatmul.mubr.msk.f32.vlgmr.msra.gmra.mrb[0].mxu1 %vm210_vm2, %v207_v16 }
 0x168   :  { %711 = vmatprep.mubr.msk.f32.mxu1 %vm995_vm0, %v996_v1  ;;  %788 = vmatpush3.bf16.msra.mxu1 %v787_v23  ;;  %v402_v1 = vld [vmem:[#allocation11 + $0x30] sm:$0xff] }
 0x169   :  { %789 = vmatprep.subr.bf16.mxu1 %v994_v0  ;;  %v796_v30 = vpack.c.bf16 %v403_v29, %v402_v1 }
 0x16c   :  { %791 = vmatpush3.bf16.msra.mxu1 %v790_v25 }
 0x16d   :  { %792 = vmatprep.subr.bf16.mxu1 %v994_v0 }
 0x170   :  { %794 = vmatpush3.bf16.msra.mxu1 %v793_v28 }
 0x171   :  { %795 = vmatprep.subr.bf16.mxu1 %v994_v0 }
 0x174   :  { %797 = vmatpush3.bf16.msra.mxu1 %v796_v30 }
 0x175   :  { %798 = vmatprep.subr.bf16.mxu1 %v994_v0 }
 0x178   :  { %800 = vmatpush3.bf16.msra.mxu1 %v799_v33 }
 0x179   :  { %801 = vmatprep.subr.bf16.mxu1 %v994_v0 }
 0x17c   :  { %803 = vmatpush3.bf16.msra.mxu1 %v802_v36 }
 0x17d   :  { %804 = vmatprep.subr.bf16.mxu1 %v994_v0 }
 0x180   :  { %806 = vmatpush3.bf16.msra.mxu1 %v805_v39 }
 0x181   :  { %807 = vmatprep.subr.bf16.mxu1 %v994_v0  ;;  %v393_v0 = vld [vmem:[#allocation5 + $0x18] sm:$0xff] }
 0x182   :  { %vm394_vm4 = vcmp.lt.s32.totalorder %v393_v0, 1288490189 }
 0x184   :  { %809 = vmatpush3.bf16.msra.mxu1 %v808_v48 }
 0x23a   :  { %v295_v42 = vpop.f32.mrb[0].mxu1 }
 0x23b   :  { %v296_v43 = vadd.f32 %v295_v42, %v228_v40  ;;  %v643_v44 = vpop.f32.mrb[1].mxu1 }
 0x23d   :  { %v299_v45 = vmax.f32 %v296_v43, 0.0 }
 0x23f   :  { %677 = vmatmul.mubr.msk.f32.vlgmr.msra.gmra.mrb[2].mxu0 %vm302_vm3, %v299_v45 }
 0x312   :  { %v387_v50 = vpop.f32.mrb[2].mxu0 }
 0x313   :  { %v388_v51 = vadd.f32 %v387_v50, %v320_v49  ;;  %v678_v52 = vpop.f32.mrb[3].mxu0 }
 0x315   :  { %v391_v53 = vmax.f32 %v388_v51, 0.0 }
 0x317   :  { %712 = vmatmul.mubr.msk.f32.vlgmr.msra.gmra.mrb[2].mxu1 %vm394_vm4, %v391_v53 }
 0x3ea   :  { %v479_v55 = vpop.f32.mrb[2].mxu1 }
 0x3eb   :  { %v480_v56 = vadd.f32 %v479_v55, %v412_v54  ;;  %v713_v57 = vpop.f32.mrb[3].mxu1 }
 0x3ed   :  { %483 = vst [vmem:[#allocation13] sm:$0xff] %v480_v56 }
 0x3ee   :  { %965 = shalt.err (!%p962_p10)
}
 0x3ef   :  { %s966_s28 = scalar_lea.hbm %s1214_s10, 128 }
 0x3f0   :  { %p967_p11 = scmp.ne.s32.totalorder %s1214_s10, %s966_s28  ;;  %p970_p12 = scmp.lt.u32.totalorder %s966_s28, %s1214_s10 }
 0x3f2   :  { %p972_p13 = pnand %p970_p12, %p967_p11 }
 0x3f4   :  { %975 = shalt.err (!%p972_p13)
}
 0x3f5   :  { %493 = dma.vmem_to_hbm [thread:$0]  %s491_s29, 128, %s1214_s10, [#allocation4]  }
 0x3f6   :  { %984 = dma.done.wait [#allocation4], 128  }
 0x3f7   :  { %985 = vsyncadd [#allocation4], 4294967168 }
 0x3f8   :  { %497 = vsyncpa [#allocation3], 1 }
 0x3f9   :  { %498 = vsyncpa [#allocation6], 1 }
 0x3fa   :  { %499 = vsyncpa [#allocation9], 1 }
 0x3fb   :  { %500 = vsyncpa [#allocation12], 1 }
 0x3fc   :  { %501 = vsyncpa [#allocation4], 1 }

</bundles_post_ra>
